<compile_context>
chip_gen: v5e
topology: v5e:2x2
jax: 0.10.0
libtpu: 0.0.40
codegen_flags: <defaults>
</compile_context>

<pallas_src>
import functools

import jax
import jax.numpy as jnp
from jax.experimental import pallas as pl
from jax.experimental.pallas import tpu as pltpu

F_PAD = 128     # lane-dense padded feature width (vreg lane count)
N_ALIGN = 128   # node-dim padding so a_hat is lane-dense for the MXU


# ----------------------------- Pallas kernel ------------------------------- #

def _encoder_kernel(a_ref, x_ref, w_ref, b_ref, gamma_ref, beta_ref, o_ref,
                    *, n_valid, num_layers):
    n_pad = a_ref.shape[0]

    # Validity mask over (padded) node rows; padded rows are excluded from the
    # BatchNorm statistics and zeroed in the output.
    row_ids = jax.lax.broadcasted_iota(jnp.int32, (n_pad, 1), 0)
    row_mask = (row_ids < n_valid).astype(jnp.float32)
    inv_n = 1.0 / float(n_valid)

    a = a_ref[...]          # bf16 adjacency, resident in VMEM for all layers
    x = x_ref[...]          # f32 activations, carried layer-to-layer in VMEM

    for layer in range(num_layers):          # static unroll (num_layers small)
        w = w_ref[layer]                     # (F_PAD, F_PAD) bf16

        # Neighbor aggregation + linear transform on the MXU (bf16 in, f32 acc).
        h = jnp.dot(a, x.astype(jnp.bfloat16), preferred_element_type=jnp.float32)
        z = jnp.dot(h.astype(jnp.bfloat16), w, preferred_element_type=jnp.float32)
        z = z + b_ref[layer]

        # ReLU (VPU, f32).
        z = jnp.maximum(z, 0.0)

        # BatchNorm1d over nodes: one-pass stats (sum, sum-of-squares),
        # masked to valid rows, biased variance, eps=1e-5 (PyTorch semantics).
        zm = z * row_mask
        s1 = jnp.sum(zm, axis=0, keepdims=True)
        s2 = jnp.sum(zm * zm, axis=0, keepdims=True)
        mean = s1 * inv_n
        var = jnp.maximum(s2 * inv_n - mean * mean, 0.0)
        z = (z - mean) * jax.lax.rsqrt(var + 1e-5)
        x = z * gamma_ref[layer] + beta_ref[layer]
        # TODO(synk): dropout is identity (eval-mode); PyG pooling layers
        # (EdgePool/TopKPool/SAGPool) are not implemented — is_pooling=False path.

    o_ref[...] = x * row_mask


def _full_spec(shape):
    # One grid point; every operand is a single full-array VMEM block.
    return pl.BlockSpec(shape, lambda i: tuple(0 for _ in shape))


@functools.partial(jax.jit, static_argnames=("n_valid", "num_layers"))
def encoder_forward(a_hat, x, ws, bs, gammas, betas, *, n_valid, num_layers):
    n_pad = a_hat.shape[0]
    f_pad = x.shape[1]

    kernel = functools.partial(
        _encoder_kernel, n_valid=n_valid, num_layers=num_layers)

    flops = num_layers * (2 * n_pad * n_pad * f_pad + 2 * n_pad * f_pad * f_pad)
    bytes_accessed = (
        2 * n_pad * n_pad                       # a_hat (bf16)
        + 4 * n_pad * f_pad                     # x (f32)
        + 2 * num_layers * f_pad * f_pad        # weights (bf16)
        + 4 * 3 * num_layers * f_pad            # b / gamma / beta (f32)
        + 4 * n_pad * f_pad                     # output (f32)
    )

    return pl.pallas_call(
        kernel,
        out_shape=jax.ShapeDtypeStruct((n_pad, f_pad), jnp.float32),
        grid=(1,),
        in_specs=[
            _full_spec((n_pad, n_pad)),
            _full_spec((n_pad, f_pad)),
            _full_spec((num_layers, f_pad, f_pad)),
            _full_spec((num_layers, 1, f_pad)),
            _full_spec((num_layers, 1, f_pad)),
            _full_spec((num_layers, 1, f_pad)),
        ],
        out_specs=_full_spec((n_pad, f_pad)),
        compiler_params=pltpu.CompilerParams(
            dimension_semantics=("arbitrary",)),
        cost_estimate=pl.CostEstimate(
            flops=flops,
            transcendentals=num_layers * f_pad,
            bytes_accessed=bytes_accessed),
    )(a_hat, x, ws, bs, gammas, betas)


# ------------------------------ JAX glue ------------------------------------ #

def build_normalized_adjacency(edge_index, num_nodes, edge_weight=None):
    """GCN-style A_hat = D^{-1/2} (A + I) D^{-1/2} from COO edge_index [2, E].

    edge_weight (e.g. data.edge_attr) is used as the adjacency value; the
    diagonal is forced to exactly 1 so explicit self-loop edges are not
    double-counted.
    """
    src = edge_index[0]
    dst = edge_index[1]
    if edge_weight is None:
        w = jnp.ones(src.shape[0], jnp.float32)
    else:
        w = jnp.asarray(edge_weight, jnp.float32).reshape(-1)
    a = jnp.zeros((num_nodes, num_nodes), jnp.float32)
    a = a.at[dst, src].set(w)            # message flows src -> dst
    a = a.at[src, dst].set(w)            # undirected graph
    diag = jnp.arange(num_nodes)
    a = a.at[diag, diag].set(1.0)        # self loops (exactly 1, no doubling)
    deg = a.sum(axis=1)
    d_inv_sqrt = jnp.where(deg > 0, 1.0 / jnp.sqrt(deg), 0.0)
    return d_inv_sqrt[:, None] * a * d_inv_sqrt[None, :]


class EncoderPallas:
    """Mirrors Encoder.forward with is_pooling=False: for each layer
    x = dropout(norm(act(conv(x, edge_index))))  then returns
    (data, x, edge_index, edge_attr, unpool_info)."""

    def __init__(self, key, in_channels=8, hidden_channels=(16, 32)):
        dims = (in_channels,) + tuple(hidden_channels)
        num_layers = len(hidden_channels)
        self.num_layers = num_layers
        self.out_channels = hidden_channels[-1]

        ws = jnp.zeros((num_layers, F_PAD, F_PAD), jnp.float32)
        gammas = jnp.zeros((num_layers, 1, F_PAD), jnp.float32)
        for i in range(num_layers):
            key, kw = jax.random.split(key)
            f_in, f_out = dims[i], dims[i + 1]
            # Deterministic Glorot-ish init for conv weight; BN gamma=1, beta=0.
            w = jax.random.normal(kw, (f_in, f_out), jnp.float32) / jnp.sqrt(f_in)
            ws = ws.at[i, :f_in, :f_out].set(w)
            gammas = gammas.at[i, 0, :f_out].set(1.0)

        self.ws = ws.astype(jnp.bfloat16)   # MXU-fed weights kept in bf16
        self.bs = jnp.zeros((num_layers, 1, F_PAD), jnp.float32)
        self.gammas = gammas
        self.betas = jnp.zeros((num_layers, 1, F_PAD), jnp.float32)

    def __call__(self, x, edge_index, edge_attr=None):
        n, f_in = x.shape
        n_pad = ((n + N_ALIGN - 1) // N_ALIGN) * N_ALIGN

        a_hat = build_normalized_adjacency(edge_index, n, edge_weight=edge_attr)
        a_pad = jnp.zeros((n_pad, n_pad), jnp.float32).at[:n, :n].set(a_hat)
        x_pad = jnp.zeros((n_pad, F_PAD), jnp.float32).at[:n, :f_in].set(
            jnp.asarray(x, jnp.float32))

        out = encoder_forward(
            a_pad.astype(jnp.bfloat16), x_pad,
            self.ws, self.bs, self.gammas, self.betas,
            n_valid=n, num_layers=self.num_layers)

        out_x = out[:n, :self.out_channels]
        unpool_info = None   # is_pooling=False path
        data = {"x": out_x, "edge_index": edge_index, "edge_attr": edge_attr}
        return data, out_x, edge_index, edge_attr, unpool_info


# -------------------------------- main -------------------------------------- #

if __name__ == "__main__":
    key = jax.random.PRNGKey(0)
    k_feat, k_params = jax.random.split(key)

    num_nodes = 16
    in_channels = 8

    # Node features [N, F_in]
    x = jax.random.normal(k_feat, (num_nodes, in_channels), jnp.float32)

    # Ring graph + a few chords: edge_index [2, E]
    src = jnp.arange(num_nodes, dtype=jnp.int32)
    dst = (src + 1) % num_nodes
    chord_src = jnp.arange(0, num_nodes, 4, dtype=jnp.int32)
    chord_dst = (chord_src + num_nodes // 2) % num_nodes
    edge_index = jnp.stack(
        [jnp.concatenate([src, chord_src]), jnp.concatenate([dst, chord_dst])], axis=0
    )
    # Synthetic per-edge attributes (used as edge weights) [E, 1]
    edge_attr = jnp.ones((edge_index.shape[1], 1), jnp.float32)

    encoder = EncoderPallas(k_params, in_channels=in_channels, hidden_channels=(16, 32))
    data, out_x, out_edge_index, out_edge_attr, unpool_info = encoder(
        x, edge_index, edge_attr
    )
    out_x = jax.block_until_ready(out_x)

    assert out_x.shape == (num_nodes, 32)
    assert bool(jnp.all(jnp.isfinite(out_x)))
    print("KERNEL_OK")
</pallas_src>

<mosaic_0001>
module attributes {stable_mosaic.version = 11 : i64} {
  func.func @_encoder_kernel(%arg0: i32, %arg1: memref<128x128xbf16, #tpu.memory_space<vmem>>, %arg2: memref<128x128xf32, #tpu.memory_space<vmem>>, %arg3: memref<2x128x128xbf16, #tpu.memory_space<vmem>>, %arg4: memref<2x1x128xf32, #tpu.memory_space<vmem>>, %arg5: memref<2x1x128xf32, #tpu.memory_space<vmem>>, %arg6: memref<2x1x128xf32, #tpu.memory_space<vmem>>, %arg7: memref<128x128xf32, #tpu.memory_space<vmem>>) attributes {dimension_semantics = [#tpu.dimension_semantics<arbitrary>], iteration_bounds = array<i64: 1>, scalar_prefetch = 0 : i64, scratch_operands = 0 : i64, tpu.core_type = #tpu.core_type<tc>, window_params = [{pipeline_mode = #tpu.pipeline_mode<synchronous>, transform_indices = @transform_0, window_bounds = array<i64: 128, 128>}, {pipeline_mode = #tpu.pipeline_mode<synchronous>, transform_indices = @transform_1, window_bounds = array<i64: 128, 128>}, {pipeline_mode = #tpu.pipeline_mode<synchronous>, transform_indices = @transform_2, window_bounds = array<i64: 2, 128, 128>}, {pipeline_mode = #tpu.pipeline_mode<synchronous>, transform_indices = @transform_3, window_bounds = array<i64: 2, 1, 128>}, {pipeline_mode = #tpu.pipeline_mode<synchronous>, transform_indices = @transform_4, window_bounds = array<i64: 2, 1, 128>}, {pipeline_mode = #tpu.pipeline_mode<synchronous>, transform_indices = @transform_5, window_bounds = array<i64: 2, 1, 128>}, {pipeline_mode = #tpu.pipeline_mode<synchronous>, transform_indices = @transform_6, window_bounds = array<i64: 128, 128>}]} {
    %0 = tpu.iota {dimensions = array<i32: 0>} : vector<128x1xi32>
    %c16_i32 = arith.constant 16 : i32
    %1 = vector.broadcast %c16_i32 : i32 to vector<128x1xi32>
    %2 = arith.cmpi slt, %0, %1 : vector<128x1xi32>
    %3 = arith.extui %2 : vector<128x1xi1> to vector<128x1xi32>
    %4 = arith.sitofp %3 : vector<128x1xi32> to vector<128x1xf32>
    %c0 = arith.constant 0 : index
    %c0_0 = arith.constant 0 : index
    %5 = vector.load %arg1[%c0, %c0_0] : memref<128x128xbf16, #tpu.memory_space<vmem>>, vector<128x128xbf16>
    %c0_1 = arith.constant 0 : index
    %c0_2 = arith.constant 0 : index
    %6 = vector.load %arg2[%c0_1, %c0_2] : memref<128x128xf32, #tpu.memory_space<vmem>>, vector<128x128xf32>
    %c0_3 = arith.constant 0 : index
    %c0_4 = arith.constant 0 : index
    %c0_5 = arith.constant 0 : index
    %7 = vector.load %arg3[%c0_3, %c0_4, %c0_5] : memref<2x128x128xbf16, #tpu.memory_space<vmem>>, vector<1x128x128xbf16>
    %8 = vector.shape_cast %7 : vector<1x128x128xbf16> to vector<128x128xbf16>
    %9 = arith.truncf %6 : vector<128x128xf32> to vector<128x128xbf16>
    %cst = arith.constant dense<0.000000e+00> : vector<128x128xf32>
    %10 = tpu.matmul %5, %9, %cst {dimension_numbers = #tpu.dot_dimension_numbers<[1], [0], [0], [1], [0, 0, 1, 1], [], []>} : vector<128x128xbf16>, vector<128x128xbf16>, vector<128x128xf32> -> vector<128x128xf32>
    %11 = arith.truncf %10 : vector<128x128xf32> to vector<128x128xbf16>
    %cst_6 = arith.constant dense<0.000000e+00> : vector<128x128xf32>
    %12 = tpu.matmul %11, %8, %cst_6 {dimension_numbers = #tpu.dot_dimension_numbers<[1], [0], [0], [1], [0, 0, 1, 1], [], []>} : vector<128x128xbf16>, vector<128x128xbf16>, vector<128x128xf32> -> vector<128x128xf32>
    %c0_7 = arith.constant 0 : index
    %c0_8 = arith.constant 0 : index
    %c0_9 = arith.constant 0 : index
    %13 = vector.load %arg4[%c0_7, %c0_8, %c0_9] : memref<2x1x128xf32, #tpu.memory_space<vmem>>, vector<1x1x128xf32>
    %14 = vector.shape_cast %13 : vector<1x1x128xf32> to vector<1x128xf32>
    %15 = vector.broadcast %14 : vector<1x128xf32> to vector<128x128xf32>
    %16 = arith.addf %12, %15 : vector<128x128xf32>
    %cst_10 = arith.constant 0.000000e+00 : f32
    %17 = vector.broadcast %cst_10 : f32 to vector<128x128xf32>
    %18 = arith.maximumf %16, %17 : vector<128x128xf32>
    %19 = vector.broadcast %4 : vector<128x1xf32> to vector<128x128xf32>
    %20 = arith.mulf %18, %19 : vector<128x128xf32>
    %cst_11 = arith.constant dense<0.000000e+00> : vector<128xf32>
    %21 = vector.multi_reduction <add>, %20, %cst_11 [0] : vector<128x128xf32> to vector<128xf32>
    %22 = vector.shape_cast %21 : vector<128xf32> to vector<1x128xf32>
    %23 = arith.mulf %20, %20 : vector<128x128xf32>
    %cst_12 = arith.constant dense<0.000000e+00> : vector<128xf32>
    %24 = vector.multi_reduction <add>, %23, %cst_12 [0] : vector<128x128xf32> to vector<128xf32>
    %25 = vector.shape_cast %24 : vector<128xf32> to vector<1x128xf32>
    %cst_13 = arith.constant 6.250000e-02 : f32
    %26 = vector.broadcast %cst_13 : f32 to vector<1x128xf32>
    %27 = arith.mulf %22, %26 : vector<1x128xf32>
    %cst_14 = arith.constant 6.250000e-02 : f32
    %28 = vector.broadcast %cst_14 : f32 to vector<1x128xf32>
    %29 = arith.mulf %25, %28 : vector<1x128xf32>
    %30 = arith.mulf %27, %27 : vector<1x128xf32>
    %31 = arith.subf %29, %30 : vector<1x128xf32>
    %cst_15 = arith.constant 0.000000e+00 : f32
    %32 = vector.broadcast %cst_15 : f32 to vector<1x128xf32>
    %33 = arith.maximumf %31, %32 : vector<1x128xf32>
    %34 = vector.broadcast %27 : vector<1x128xf32> to vector<128x128xf32>
    %35 = arith.subf %18, %34 : vector<128x128xf32>
    %cst_16 = arith.constant 9.99999974E-6 : f32
    %36 = vector.broadcast %cst_16 : f32 to vector<1x128xf32>
    %37 = arith.addf %33, %36 : vector<1x128xf32>
    %38 = math.rsqrt %37 : vector<1x128xf32>
    %39 = vector.broadcast %38 : vector<1x128xf32> to vector<128x128xf32>
    %40 = arith.mulf %35, %39 : vector<128x128xf32>
    %c0_17 = arith.constant 0 : index
    %c0_18 = arith.constant 0 : index
    %c0_19 = arith.constant 0 : index
    %41 = vector.load %arg5[%c0_17, %c0_18, %c0_19] : memref<2x1x128xf32, #tpu.memory_space<vmem>>, vector<1x1x128xf32>
    %42 = vector.shape_cast %41 : vector<1x1x128xf32> to vector<1x128xf32>
    %43 = vector.broadcast %42 : vector<1x128xf32> to vector<128x128xf32>
    %44 = arith.mulf %40, %43 : vector<128x128xf32>
    %c0_20 = arith.constant 0 : index
    %c0_21 = arith.constant 0 : index
    %c0_22 = arith.constant 0 : index
    %45 = vector.load %arg6[%c0_20, %c0_21, %c0_22] : memref<2x1x128xf32, #tpu.memory_space<vmem>>, vector<1x1x128xf32>
    %46 = vector.shape_cast %45 : vector<1x1x128xf32> to vector<1x128xf32>
    %47 = vector.broadcast %46 : vector<1x128xf32> to vector<128x128xf32>
    %48 = arith.addf %44, %47 : vector<128x128xf32>
    %c1 = arith.constant 1 : index
    %c0_23 = arith.constant 0 : index
    %c0_24 = arith.constant 0 : index
    %49 = vector.load %arg3[%c1, %c0_23, %c0_24] : memref<2x128x128xbf16, #tpu.memory_space<vmem>>, vector<1x128x128xbf16>
    %50 = vector.shape_cast %49 : vector<1x128x128xbf16> to vector<128x128xbf16>
    %51 = arith.truncf %48 : vector<128x128xf32> to vector<128x128xbf16>
    %cst_25 = arith.constant dense<0.000000e+00> : vector<128x128xf32>
    %52 = tpu.matmul %5, %51, %cst_25 {dimension_numbers = #tpu.dot_dimension_numbers<[1], [0], [0], [1], [0, 0, 1, 1], [], []>} : vector<128x128xbf16>, vector<128x128xbf16>, vector<128x128xf32> -> vector<128x128xf32>
    %53 = arith.truncf %52 : vector<128x128xf32> to vector<128x128xbf16>
    %cst_26 = arith.constant dense<0.000000e+00> : vector<128x128xf32>
    %54 = tpu.matmul %53, %50, %cst_26 {dimension_numbers = #tpu.dot_dimension_numbers<[1], [0], [0], [1], [0, 0, 1, 1], [], []>} : vector<128x128xbf16>, vector<128x128xbf16>, vector<128x128xf32> -> vector<128x128xf32>
    %c1_27 = arith.constant 1 : index
    %c0_28 = arith.constant 0 : index
    %c0_29 = arith.constant 0 : index
    %55 = vector.load %arg4[%c1_27, %c0_28, %c0_29] : memref<2x1x128xf32, #tpu.memory_space<vmem>>, vector<1x1x128xf32>
    %56 = vector.shape_cast %55 : vector<1x1x128xf32> to vector<1x128xf32>
    %57 = vector.broadcast %56 : vector<1x128xf32> to vector<128x128xf32>
    %58 = arith.addf %54, %57 : vector<128x128xf32>
    %cst_30 = arith.constant 0.000000e+00 : f32
    %59 = vector.broadcast %cst_30 : f32 to vector<128x128xf32>
    %60 = arith.maximumf %58, %59 : vector<128x128xf32>
    %61 = vector.broadcast %4 : vector<128x1xf32> to vector<128x128xf32>
    %62 = arith.mulf %60, %61 : vector<128x128xf32>
    %cst_31 = arith.constant dense<0.000000e+00> : vector<128xf32>
    %63 = vector.multi_reduction <add>, %62, %cst_31 [0] : vector<128x128xf32> to vector<128xf32>
    %64 = vector.shape_cast %63 : vector<128xf32> to vector<1x128xf32>
    %65 = arith.mulf %62, %62 : vector<128x128xf32>
    %cst_32 = arith.constant dense<0.000000e+00> : vector<128xf32>
    %66 = vector.multi_reduction <add>, %65, %cst_32 [0] : vector<128x128xf32> to vector<128xf32>
    %67 = vector.shape_cast %66 : vector<128xf32> to vector<1x128xf32>
    %cst_33 = arith.constant 6.250000e-02 : f32
    %68 = vector.broadcast %cst_33 : f32 to vector<1x128xf32>
    %69 = arith.mulf %64, %68 : vector<1x128xf32>
    %cst_34 = arith.constant 6.250000e-02 : f32
    %70 = vector.broadcast %cst_34 : f32 to vector<1x128xf32>
    %71 = arith.mulf %67, %70 : vector<1x128xf32>
    %72 = arith.mulf %69, %69 : vector<1x128xf32>
    %73 = arith.subf %71, %72 : vector<1x128xf32>
    %cst_35 = arith.constant 0.000000e+00 : f32
    %74 = vector.broadcast %cst_35 : f32 to vector<1x128xf32>
    %75 = arith.maximumf %73, %74 : vector<1x128xf32>
    %76 = vector.broadcast %69 : vector<1x128xf32> to vector<128x128xf32>
    %77 = arith.subf %60, %76 : vector<128x128xf32>
    %cst_36 = arith.constant 9.99999974E-6 : f32
    %78 = vector.broadcast %cst_36 : f32 to vector<1x128xf32>
    %79 = arith.addf %75, %78 : vector<1x128xf32>
    %80 = math.rsqrt %79 : vector<1x128xf32>
    %81 = vector.broadcast %80 : vector<1x128xf32> to vector<128x128xf32>
    %82 = arith.mulf %77, %81 : vector<128x128xf32>
    %c1_37 = arith.constant 1 : index
    %c0_38 = arith.constant 0 : index
    %c0_39 = arith.constant 0 : index
    %83 = vector.load %arg5[%c1_37, %c0_38, %c0_39] : memref<2x1x128xf32, #tpu.memory_space<vmem>>, vector<1x1x128xf32>
    %84 = vector.shape_cast %83 : vector<1x1x128xf32> to vector<1x128xf32>
    %85 = vector.broadcast %84 : vector<1x128xf32> to vector<128x128xf32>
    %86 = arith.mulf %82, %85 : vector<128x128xf32>
    %c1_40 = arith.constant 1 : index
    %c0_41 = arith.constant 0 : index
    %c0_42 = arith.constant 0 : index
    %87 = vector.load %arg6[%c1_40, %c0_41, %c0_42] : memref<2x1x128xf32, #tpu.memory_space<vmem>>, vector<1x1x128xf32>
    %88 = vector.shape_cast %87 : vector<1x1x128xf32> to vector<1x128xf32>
    %89 = vector.broadcast %88 : vector<1x128xf32> to vector<128x128xf32>
    %90 = arith.addf %86, %89 : vector<128x128xf32>
    %91 = vector.broadcast %4 : vector<128x1xf32> to vector<128x128xf32>
    %92 = arith.mulf %90, %91 : vector<128x128xf32>
    %c0_43 = arith.constant 0 : index
    %c0_44 = arith.constant 0 : index
    %93 = vector.load %arg7[%c0_43, %c0_44] : memref<128x128xf32, #tpu.memory_space<vmem>>, vector<128x128xf32>
    tpu.vector_store %arg7[%c0_43, %c0_44], %92 {strides = array<i32>} : memref<128x128xf32, #tpu.memory_space<vmem>>, vector<128x128xf32>,
    return
  }
  func.func @transform_0(%arg0: i32) -> (i32, i32) {
    %c0_i32 = arith.constant 0 : i32
    %c0_i32_0 = arith.constant 0 : i32
    %c0_i32_1 = arith.constant 0 : i32
    return %c0_i32, %c0_i32_0 : i32, i32
  }
  func.func @transform_1(%arg0: i32) -> (i32, i32) {
    %c0_i32 = arith.constant 0 : i32
    %c0_i32_0 = arith.constant 0 : i32
    %c0_i32_1 = arith.constant 0 : i32
    return %c0_i32, %c0_i32_0 : i32, i32
  }
  func.func @transform_2(%arg0: i32) -> (i32, i32, i32) {
    %c0_i32 = arith.constant 0 : i32
    %c0_i32_0 = arith.constant 0 : i32
    %c0_i32_1 = arith.constant 0 : i32
    %c0_i32_2 = arith.constant 0 : i32
    return %c0_i32, %c0_i32_0, %c0_i32_1 : i32, i32, i32
  }
  func.func @transform_3(%arg0: i32) -> (i32, i32, i32) {
    %c0_i32 = arith.constant 0 : i32
    %c0_i32_0 = arith.constant 0 : i32
    %c0_i32_1 = arith.constant 0 : i32
    %c0_i32_2 = arith.constant 0 : i32
    return %c0_i32, %c0_i32_0, %c0_i32_1 : i32, i32, i32
  }
  func.func @transform_4(%arg0: i32) -> (i32, i32, i32) {
    %c0_i32 = arith.constant 0 : i32
    %c0_i32_0 = arith.constant 0 : i32
    %c0_i32_1 = arith.constant 0 : i32
    %c0_i32_2 = arith.constant 0 : i32
    return %c0_i32, %c0_i32_0, %c0_i32_1 : i32, i32, i32
  }
  func.func @transform_5(%arg0: i32) -> (i32, i32, i32) {
    %c0_i32 = arith.constant 0 : i32
    %c0_i32_0 = arith.constant 0 : i32
    %c0_i32_1 = arith.constant 0 : i32
    %c0_i32_2 = arith.constant 0 : i32
    return %c0_i32, %c0_i32_0, %c0_i32_1 : i32, i32, i32
  }
  func.func @transform_6(%arg0: i32) -> (i32, i32) {
    %c0_i32 = arith.constant 0 : i32
    %c0_i32_0 = arith.constant 0 : i32
    %c0_i32_1 = arith.constant 0 : i32
    return %c0_i32, %c0_i32_0 : i32, i32
  }
}

</mosaic_0001>

<bundles_post_ra>
// kernel: encoder_forward.1
= control target key start
LH: loop header
LB: loop body
LE: loop exit
PB: predicated region body
PF: predicated region fallthrough
CT: control target
= control target key end

     0   :  { %11 = vsyncpa [#allocation3], 0  ;;  %s1682_s0 = inlined_call_operand.hbm [shape: bf16[128,128], index: 0, kind: input, shape index: {}]   ;;  %s1683_s1 = inlined_call_operand.hbm [shape: f32[128,128], index: 1, kind: input, shape index: {}]   ;;  %s1684_s2 = inlined_call_operand.hbm [shape: bf16[2,128,128], index: 2, kind: input, shape index: {}]   ;;  %s1685_s3 = inlined_call_operand.vmem [shape: f32[2,1,128], index: 3, kind: input, shape index: {}]   ;;  %s1686_s4 = inlined_call_operand.hbm [shape: f32[2,1,128], index: 4, kind: input, shape index: {}]   ;;  %s1687_s5 = inlined_call_operand.vmem [shape: f32[2,1,128], index: 5, kind: input, shape index: {}]   ;;  %s1688_s6 = inlined_call_operand.hbm [shape: f32[128,128], index: 6, kind: output, shape index: {}]  }
   0x1   :  { %12 = vsyncpa [#allocation6], 0 }
   0x2   :  { %13 = vsyncpa [#allocation9], 0  ;;  %s32_s23 = sshll.u32 %s1683_s1, 4  ;;  %s33_s23 = int_to_ptr.hbm [resolvable:$true] %s32_s23 }
   0x3   :  { %14 = vsyncpa [#allocation4], 0  ;;  %s1280_s24 = smov [#allocation5]   ;;  %s19_s28 = sshll.u32 %s1682_s0, 4  ;;  %s20_s28 = int_to_ptr.hbm [resolvable:$true] %s19_s28 }
   0x4   :  { %s34_s25 = sshll.u32 %s1280_s24, 4  ;;  %s1281_s29 = smov 128   ;;  %s35_s25 = int_to_ptr.vmem [resolvable:$true] %s34_s25 }
   0x5   :  { %s1282_s30 = smov 8   ;;  %s1283_s7 = smov [#allocation2]  }
   0x6   :  { %40 = dma.hbm_to_vmem [thread:$0]  %s33_s23, 2048, %s35_s25, [#allocation6], %s1281_s29, %s1281_s29, %s1282_s30  }
   0x7   :  { %s21_s8 = sshll.u32 %s1283_s7, 4  ;;  %s1284_s1 = smov 64   ;;  %s22_s8 = int_to_ptr.vmem [resolvable:$true] %s21_s8 }
   0x8   :  { %s1285_s9 = smov 4   ;;  %s45_s12 = sshll.u32 %s1684_s2, 4  ;;  %s46_s12 = int_to_ptr.hbm [resolvable:$true] %s45_s12 }
   0x9   :  { %27 = dma.hbm_to_vmem [thread:$0]  %s20_s28, 1024, %s22_s8, [#allocation3], %s1284_s1, %s1284_s1, %s1285_s9  }
   0xa   :  { %s1286_s13 = smov [#allocation7]   ;;  %s60_s16 = sshll.u32 %s1686_s4, 4  ;;  %s61_s16 = int_to_ptr.hbm [resolvable:$true] %s60_s16 }
   0xb   :  { %s47_s0 = sshll.u32 %s1286_s13, 4  ;;  %s1287_s17 = smov [#allocation8]   ;;  %s48_s0 = int_to_ptr.vmem [resolvable:$true] %s47_s0 }
   0xc   :  { %53 = dma.hbm_to_vmem [thread:$0]  %s46_s12, 2048, %s48_s0, [#allocation6], %s1284_s1, %s1284_s1, %s1285_s9  }
   0xd   :  { %s62_s18 = sshll.u32 %s1287_s17, 4  ;;  %s1288_s19 = smov 16   ;;  %s63_s18 = int_to_ptr.vmem [resolvable:$true] %s62_s18 }
   0xe   :  { %s1289_s20 = smov 1  }
   0xf   :  { %68 = dma.hbm_to_vmem [thread:$0]  %s61_s16, 32, %s63_s18, [#allocation9], %s1288_s19, %s1288_s19, %s1289_s20  }
  0x10   :  { %1272 = dma.done.wait [#allocation3], 1024  }
  0x11   :  { %1273 = vsyncadd [#allocation3], 4294966272 }
  0x12   :  { %1274 = dma.done.wait [#allocation6], 4096  }
  0x13   :  { %1275 = vsyncadd [#allocation6], 4294963200 }
  0x14   :  { %1276 = dma.done.wait [#allocation9], 32  }
  0x15   :  { %1277 = vsyncadd [#allocation9], 4294967264  ;;  %v182_v0 = vld [vmem:[#allocation5 + $0x70] sm:$0xff]  ;;  %v183_v1 = vld [vmem:[#allocation5 + $0x78] sm:$0xff]  ;;  %s994_s7 = sshll.u32 %s1688_s6, 4  ;;  %s995_s7 = int_to_ptr.hbm [resolvable:$true] %s994_s7 }
  0x16   :  { %v180_v2 = vld [vmem:[#allocation5 + $0x60] sm:$0xff]  ;;  %v207_v3 = vpack.c.bf16 %v183_v1, %v182_v0  ;;  %v181_v4 = vld [vmem:[#allocation5 + $0x68] sm:$0xff]  ;;  %v178_v6 = vld [vmem:[#allocation5 + $0x50] sm:$0xff] }
  0x17   :  { %v206_v5 = vpack.c.bf16 %v181_v4, %v180_v2  ;;  %v179_v7 = vld [vmem:[#allocation5 + $0x58] sm:$0xff]  ;;  %v176_v9 = vld [vmem:[#allocation5 + $0x40] sm:$0xff]  ;;  %v177_v10 = vld [vmem:[#allocation5 + $0x48] sm:$0xff] }
  0x18   :  { %256 = vmatpush.bf16.msra.mxu0 %v207_v3  ;;  %v205_v8 = vpack.c.bf16 %v179_v7, %v178_v6  ;;  %v204_v11 = vpack.c.bf16 %v177_v10, %v176_v9  ;;  %v174_v12 = vld [vmem:[#allocation5 + $0x30] sm:$0xff]  ;;  %v175_v13 = vld [vmem:[#allocation5 + $0x38] sm:$0xff]  ;;  %v172_v15 = vld [vmem:[#allocation5 + $0x20] sm:$0xff] }
  0x19   :  { %v203_v14 = vpack.c.bf16 %v175_v13, %v174_v12  ;;  %v173_v16 = vld [vmem:[#allocation5 + $0x28] sm:$0xff]  ;;  %v170_v18 = vld [vmem:[#allocation5 + $0x10] sm:$0xff]  ;;  %v171_v19 = vld [vmem:[#allocation5 + $0x18] sm:$0xff] }
  0x1a   :  { %v202_v17 = vpack.c.bf16 %v173_v16, %v172_v15  ;;  %v201_v20 = vpack.c.bf16 %v171_v19, %v170_v18  ;;  %v168_v21 = vld [vmem:[#allocation5] sm:$0xff]  ;;  %v169_v22 = vld [vmem:[#allocation5 + $0x8] sm:$0xff]  ;;  %v1347_v26 = vld [vmem:[#allocation2 + $0x10] sm:$0xff] }
  0x1b   :  { %v200_v23 = vpack.c.bf16 %v169_v22, %v168_v21  ;;  %v1341_v24 = vld [vmem:[#allocation2] sm:$0xff]  ;;  %v1344_v25 = vld [vmem:[#allocation2 + $0x8] sm:$0xff]  ;;  %v1350_v27 = vld [vmem:[#allocation2 + $0x18] sm:$0xff] }
  0x1c   :  { %257 = vmatpush.bf16.msra.mxu0 %v206_v5  ;;  %v1353_v28 = vld [vmem:[#allocation2 + $0x20] sm:$0xff]  ;;  %v1122_v29 = vld [vmem:[#allocation7 + $0x38] sm:$0xff]  ;;  %v1121_v30 = vld [vmem:[#allocation7 + $0x30] sm:$0xff] }
  0x1d   :  { %365 = vmatpush.bf16.msra.mxu1 %v1122_v29  ;;  %v1356_v31 = vld [vmem:[#allocation2 + $0x28] sm:$0xff]  ;;  %v1119_v33 = vld [vmem:[#allocation7 + $0x20] sm:$0xff]  ;;  %v1118_v34 = vld [vmem:[#allocation7 + $0x18] sm:$0xff] }
  0x1e   :  { %v1120_v32 = vld [vmem:[#allocation7 + $0x28] sm:$0xff]  ;;  %v1117_v35 = vld [vmem:[#allocation7 + $0x10] sm:$0xff]  ;;  %v1115_v38 = vld [vmem:[#allocation7] sm:$0xff] }
  0x1f   :  { %v1359_v36 = vld [vmem:[#allocation2 + $0x30] sm:$0xff]  ;;  %v1116_v37 = vld [vmem:[#allocation7 + $0x8] sm:$0xff]  ;;  %v1362_v39 = vld [vmem:[#allocation2 + $0x38] sm:$0xff] }
  0x20   :  { %258 = vmatpush.bf16.msra.mxu0 %v205_v8 }
  0x21   :  { %366 = vmatpush.bf16.msra.mxu1 %v1121_v30 }
  0x24   :  { %259 = vmatpush.bf16.msra.mxu0 %v204_v11  ;;  %v1368_v11 = vld [vmem:[%s1685_s3] ss:$0 sm:$0xff] }
  0x25   :  { %367 = vmatpush.bf16.msra.mxu1 %v1120_v32 }
  0x28   :  { %260 = vmatpush.bf16.msra.mxu0 %v203_v14 }
  0x29   :  { %368 = vmatpush.bf16.msra.mxu1 %v1119_v33 }
  0x2c   :  { %261 = vmatpush.bf16.msra.mxu0 %v202_v17 }
  0x2d   :  { %369 = vmatpush.bf16.msra.mxu1 %v1118_v34 }
  0x30   :  { %262 = vmatpush.bf16.msra.mxu0 %v201_v20 }
  0x31   :  { %370 = vmatpush.bf16.msra.mxu1 %v1117_v35 }
  0x34   :  { %263 = vmatpush.bf16.msra.mxu0 %v200_v23 }
  0x35   :  { %371 = vmatpush.bf16.msra.mxu1 %v1116_v37 }
  0x37   :  { %264 = vmatmul.bf16.vlgmr.msra.gmra.mxu0 %v1341_v24 }
  0x39   :  { %372 = vmatpush.bf16.msra.mxu1 %v1115_v38 }
  0x47   :  { %269 = vmatmul.bf16.gmra.mxu0 %v1344_v25 }
  0x57   :  { %274 = vmatmul.bf16.gmra.mxu0 %v1347_v26 }
  0x67   :  { %279 = vmatmul.bf16.gmra.mxu0 %v1350_v27 }
  0x77   :  { %284 = vmatmul.bf16.gmra.mxu0 %v1353_v28 }
  0x87   :  { %289 = vmatmul.bf16.gmra.mxu0 %v1356_v31 }
  0x97   :  { %294 = vmatmul.bf16.gmra.mxu0 %v1359_v36 }
  0xa7   :  { %299 = vmatmul.bf16.gmra.mxu0 %v1362_v39 }
  0xb4   :  { %v265_v40 = vpop.f32.mrf.mxu0 }
  0xbc   :  { %v267_v41 = vpop.f32.mrf.mxu0 }
  0xbd   :  { %v305_v42 = vpack.c.bf16 %v267_v41, %v265_v40 }
  0xbf   :  { %373 = vmatmul.bf16.vlgmr.msra.gmra.mxu1 %v305_v42 }
  0xc4   :  { %v270_v43 = vpop.f32.mrf.mxu0 }
  0xcc   :  { %v272_v44 = vpop.f32.mrf.mxu0 }
  0xcd   :  { %v306_v45 = vpack.c.bf16 %v272_v44, %v270_v43 }
  0xcf   :  { %378 = vmatmul.bf16.gmra.mxu1 %v306_v45 }
  0xd4   :  { %v275_v46 = vpop.f32.mrf.mxu0 }
  0xdc   :  { %v277_v47 = vpop.f32.mrf.mxu0 }
  0xdd   :  { %v307_v48 = vpack.c.bf16 %v277_v47, %v275_v46 }
  0xdf   :  { %383 = vmatmul.bf16.gmra.mxu1 %v307_v48 }
  0xe4   :  { %v280_v49 = vpop.f32.mrf.mxu0 }
  0xec   :  { %v282_v50 = vpop.f32.mrf.mxu0 }
  0xed   :  { %v308_v51 = vpack.c.bf16 %v282_v50, %v280_v49 }
  0xef   :  { %388 = vmatmul.bf16.gmra.mxu1 %v308_v51 }
  0xf4   :  { %v285_v52 = vpop.f32.mrf.mxu0 }
  0xfc   :  { %v287_v53 = vpop.f32.mrf.mxu0 }
  0xfd   :  { %v309_v54 = vpack.c.bf16 %v287_v53, %v285_v52 }
  0xff   :  { %393 = vmatmul.bf16.gmra.mxu1 %v309_v54 }
 0x104   :  { %v290_v55 = vpop.f32.mrf.mxu0 }
 0x10c   :  { %v292_v56 = vpop.f32.mrf.mxu0 }
 0x10d   :  { %v310_v57 = vpack.c.bf16 %v292_v56, %v290_v55 }
 0x10f   :  { %398 = vmatmul.bf16.gmra.mxu1 %v310_v57 }
 0x114   :  { %v295_v58 = vpop.f32.mrf.mxu0 }
 0x11c   :  { %v297_v59 = vpop.f32.mrf.mxu0 }
 0x11d   :  { %v311_v60 = vpack.c.bf16 %v297_v59, %v295_v58 }
 0x11f   :  { %403 = vmatmul.bf16.gmra.mxu1 %v311_v60 }
 0x124   :  { %v300_v61 = vpop.f32.mrf.mxu0 }
 0x12c   :  { %v302_v62 = vpop.f32.mrf.mxu0 }
 0x12d   :  { %v312_v63 = vpack.c.bf16 %v302_v62, %v300_v61 }
 0x12f   :  { %408 = vmatmul.bf16.gmra.mxu1 %v312_v63 }
 0x13c   :  { %v374_v0 = vpop.f32.mrf.mxu1 }
 0x13d   :  { %v375_v16 = vadd.f32 %v1368_v11, %v374_v0 }
 0x13f   :  { %v1388_v22 = vmax.f32 %v375_v16, 0.0 }
 0x141   :  { %v467_v38 = vmul.f32 %v1388_v22, %v1388_v22 }
 0x144   :  { %v376_v1 = vpop.f32.mrf.mxu1 }
 0x145   :  { %v377_v13 = vadd.f32 %v1368_v11, %v376_v1 }
 0x147   :  { %v1382_v19 = vmax.f32 %v377_v13, 0.0 }
 0x149   :  { %v468_v32 = vmul.f32 %v1382_v19, %v1382_v19  ;;  %v446_v41 = vadd.f32 %v1382_v19, %v1388_v22 }
 0x14b   :  { %v483_v45 = vadd.f32 %v468_v32, %v467_v38 }
 0x14c   :  { %v379_v2 = vpop.f32.mrf.mxu1 }
 0x14d   :  { %v1371_v12 = vadd.f32 %v1368_v11, %v379_v2 }
 0x14f   :  { %v416_v17 = vmax.f32 %v1371_v12, 0.0 }
 0x151   :  { %v432_v23 = vmul.f32 0.0, %v416_v17 }
 0x153   :  { %v469_v40 = vmul.f32 %v432_v23, %v432_v23  ;;  %v447_v46 = vadd.f32 %v446_v41, %v432_v23 }
 0x154   :  { %v381_v3 = vpop.f32.mrf.mxu1 }
 0x155   :  { %v1375_v14 = vadd.f32 %v1368_v11, %v381_v3  ;;  %v484_v50 = vadd.f32 %v483_v45, %v469_v40 }
 0x157   :  { %v417_v20 = vmax.f32 %v1375_v14, 0.0 }
 0x159   :  { %v433_v33 = vmul.f32 0.0, %v417_v20 }
 0x15b   :  { %v470_v47 = vmul.f32 %v433_v33, %v433_v33  ;;  %v448_v52 = vadd.f32 %v447_v46, %v433_v33 }
 0x15c   :  { %v384_v4 = vpop.f32.mrf.mxu1 }
 0x15d   :  { %v1380_v18 = vadd.f32 %v1368_v11, %v384_v4  ;;  %v485_v57 = vadd.f32 %v484_v50, %v470_v47 }
 0x15f   :  { %v418_v29 = vmax.f32 %v1380_v18, 0.0 }
 0x161   :  { %v434_v42 = vmul.f32 0.0, %v418_v29 }
 0x163   :  { %v471_v53 = vmul.f32 %v434_v42, %v434_v42  ;;  %v449_v58 = vadd.f32 %v448_v52, %v434_v42 }
 0x164   :  { %v386_v5 = vpop.f32.mrf.mxu1 }
 0x165   :  { %v1386_v21 = vadd.f32 %v1368_v11, %v386_v5  ;;  %v486_v0 = vadd.f32 %v485_v57, %v471_v53 }
 0x167   :  { %v419_v34 = vmax.f32 %v1386_v21, 0.0 }
 0x169   :  { %v435_v48 = vmul.f32 0.0, %v419_v34 }
 0x16b   :  { %v472_v59 = vmul.f32 %v435_v48, %v435_v48  ;;  %v450_v1 = vadd.f32 %v449_v58, %v435_v48 }
 0x16c   :  { %v389_v6 = vpop.f32.mrf.mxu1 }
 0x16d   :  { %v1394_v30 = vadd.f32 %v1368_v11, %v389_v6  ;;  %v487_v6 = vadd.f32 %v486_v0, %v472_v59 }
 0x16f   :  { %v420_v43 = vmax.f32 %v1394_v30, 0.0 }
 0x171   :  { %v436_v54 = vmul.f32 0.0, %v420_v43 }
 0x173   :  { %v473_v2 = vmul.f32 %v436_v54, %v436_v54 }
 0x174   :  { %v391_v7 = vpop.f32.mrf.mxu1 }
 0x175   :  { %v1402_v35 = vadd.f32 %v1368_v11, %v391_v7  ;;  %v451_v7 = vadd.f32 %v450_v1, %v436_v54 }
 0x177   :  { %v421_v49 = vmax.f32 %v1402_v35, 0.0 }
 0x179   :  { %v437_v60 = vmul.f32 0.0, %v421_v49 }
 0x17b   :  { %v452_v16 = vadd.f32 %v451_v7, %v437_v60 }
 0x17c   :  { %v394_v8 = vpop.f32.mrf.mxu1 }
 0x17d   :  { %v1412_v44 = vadd.f32 %v1368_v11, %v394_v8  ;;  %v474_v8 = vmul.f32 %v437_v60, %v437_v60 }
 0x17f   :  { %v422_v55 = vmax.f32 %v1412_v44, 0.0 }
 0x181   :  { %v438_v3 = vmul.f32 0.0, %v422_v55 }
 0x183   :  { %v475_v23 = vmul.f32 %v438_v3, %v438_v3  ;;  %v453_v38 = vadd.f32 %v452_v16, %v438_v3 }
 0x184   :  { %v396_v9 = vpop.f32.mrf.mxu1 }
 0x185   :  { %v1418_v51 = vadd.f32 %v1368_v11, %v396_v9 }
 0x187   :  { %v423_v62 = vmax.f32 %v1418_v51, 0.0 }
 0x189   :  { %v439_v9 = vmul.f32 0.0, %v423_v62 }
 0x18b   :  { %v476_v41 = vmul.f32 %v439_v9, %v439_v9  ;;  %v454_v48 = vadd.f32 %v453_v38, %v439_v9 }
 0x18c   :  { %v399_v10 = vpop.f32.mrf.mxu1 }
 0x18d   :  { %v1424_v56 = vadd.f32 %v1368_v11, %v399_v10 }
 0x18f   :  { %v424_v4 = vmax.f32 %v1424_v56, 0.0 }
 0x191   :  { %v440_v32 = vmul.f32 0.0, %v424_v4 }
 0x193   :  { %v477_v50 = vmul.f32 %v440_v32, %v440_v32  ;;  %v455_v57 = vadd.f32 %v454_v48, %v440_v32 }
 0x194   :  { %v401_v15 = vpop.f32.mrf.mxu1 }
 0x195   :  { %v1430_v63 = vadd.f32 %v1368_v11, %v401_v15  ;;  %v488_v15 = vadd.f32 %v487_v6, %v473_v2 }
 0x197   :  { %v425_v10 = vmax.f32 %v1430_v63, 0.0 }
 0x199   :  { %v441_v42 = vmul.f32 0.0, %v425_v10 }
 0x19b   :  { %v478_v58 = vmul.f32 %v441_v42, %v441_v42 }
 0x19c   :  { %v404_v37 = vpop.f32.mrf.mxu1 }
 0x19d   :  { %v1436_v5 = vadd.f32 %v1368_v11, %v404_v37  ;;  %v489_v37 = vadd.f32 %v488_v15, %v474_v8 }
 0x19f   :  { %v426_v33 = vmax.f32 %v1436_v5, 0.0  ;;  %v490_v47 = vadd.f32 %v489_v37, %v475_v23  ;;  %v1479_v5 = vld [vmem:[%s1687_s5] ss:$0 sm:$0xff] }
 0x1a1   :  { %v442_v52 = vmul.f32 0.0, %v426_v33  ;;  %v491_v54 = vadd.f32 %v490_v47, %v476_v41 }
 0x1a3   :  { %v492_v60 = vadd.f32 %v491_v54, %v477_v50  ;;  %v479_v0 = vmul.f32 %v442_v52, %v442_v52 }
 0x1a4   :  { %v406_v61 = vpop.f32.mrf.mxu1 }
 0x1a5   :  { %v1442_v13 = vadd.f32 %v1368_v11, %v406_v61  ;;  %v456_v61 = vadd.f32 %v455_v57, %v441_v42  ;;  %v493_v3 = vadd.f32 %v492_v60, %v478_v58 }
 0x1a7   :  { %v427_v45 = vmax.f32 %v1442_v13, 0.0  ;;  %v457_v6 = vadd.f32 %v456_v61, %v442_v52  ;;  %v494_v9 = vadd.f32 %v493_v3, %v479_v0 }
 0x1a9   :  { %v443_v59 = vmul.f32 0.0, %v427_v45 }
 0x1ab   :  { %v480_v7 = vmul.f32 %v443_v59, %v443_v59  ;;  %v458_v15 = vadd.f32 %v457_v6, %v443_v59 }
 0x1ac   :  { %v409_v40 = vpop.f32.mrf.mxu1 }
 0x1ad   :  { %v410_v46 = vadd.f32 %v1368_v11, %v409_v40  ;;  %v495_v37 = vadd.f32 %v494_v9, %v480_v7 }
 0x1af   :  { %v428_v53 = vmax.f32 %v410_v46, 0.0 }
 0x1b1   :  { %v444_v1 = vmul.f32 0.0, %v428_v53 }
 0x1b3   :  { %v481_v16 = vmul.f32 %v444_v1, %v444_v1  ;;  %v459_v32 = vadd.f32 %v458_v15, %v444_v1 }
 0x1b4   :  { %v411_v2 = vpop.f32.mrf.mxu1 }
 0x1b5   :  { %v412_v8 = vadd.f32 %v1368_v11, %v411_v2  ;;  %v496_v40 = vadd.f32 %v495_v37, %v481_v16 }
 0x1b7   :  { %v429_v23 = vmax.f32 %v412_v8, 0.0 }
 0x1b9   :  { %v445_v38 = vmul.f32 0.0, %v429_v23 }
 0x1bb   :  { %v460_v41 = vadd.f32 %v459_v32, %v445_v38  ;;  %v482_v46 = vmul.f32 %v445_v38, %v445_v38 }
 0x1bd   :  { %v461_v47 = vrot.slane %v460_v41, 4  ;;  %v497_v42 = vadd.f32 %v496_v40, %v482_v46  ;;  %v1462_v46 = vld [vmem:[#allocation8] ss:$0 sm:$0xff] }
 0x1bf   :  { %v462_v48 = vadd.f32 %v461_v47, %v460_v41  ;;  %v498_v50 = vrot.slane %v497_v42, 4 }
 0x1c1   :  { %v463_v54 = vrot.slane %v462_v48, 2  ;;  %v499_v57 = vadd.f32 %v498_v50, %v497_v42 }
 0x1c3   :  { %v464_v52 = vadd.f32 %v463_v54, %v462_v48  ;;  %v500_v58 = vrot.slane %v499_v57, 2 }
 0x1c5   :  { %v465_v60 = vrot.slane %v464_v52, 1  ;;  %v501_v11 = vadd.f32 %v500_v58, %v499_v57 }
 0x1c7   :  { %v466_v61 = vadd.f32 %v465_v60, %v464_v52  ;;  %v502_v59 = vrot.slane %v501_v11, 1 }
 0x1c9   :  { %v503_v0 = vadd.f32 %v502_v59, %v501_v11  ;;  %v1456_v2 = vmul.f32 0.0625, %v466_v61 }
 0x1cb   :  { %v505_v1 = vmul.f32 0.0625, %v503_v0  ;;  %v506_v3 = vmul.f32 %v1456_v2, %v1456_v2  ;;  %v524_v40 = vsub.f32 %v429_v23, %v1456_v2  ;;  %v523_v41 = vsub.f32 %v428_v53, %v1456_v2 }
 0x1cc   :  { %v521_v47 = vsub.f32 %v426_v33, %v1456_v2  ;;  %v522_v42 = vsub.f32 %v427_v45, %v1456_v2  ;;  %v519_v50 = vsub.f32 %v424_v4, %v1456_v2  ;;  %v520_v23 = vsub.f32 %v425_v10, %v1456_v2 }
 0x1cd   :  { %v507_v6 = vsub.f32 %v505_v1, %v506_v3  ;;  %v517_v10 = vsub.f32 %v422_v55, %v1456_v2  ;;  %v518_v58 = vsub.f32 %v423_v62, %v1456_v2  ;;  %v515_v51 = vsub.f32 %v420_v43, %v1456_v2 }
 0x1ce   :  { %v516_v55 = vsub.f32 %v421_v49, %v1456_v2  ;;  %v513_v30 = vsub.f32 %v418_v29, %v1456_v2  ;;  %v514_v35 = vsub.f32 %v419_v34, %v1456_v2  ;;  %v511_v18 = vsub.f32 %v416_v17, %v1456_v2 }
 0x1cf   :  { %v508_v7 = vmax.f32 %v507_v6, 0.0  ;;  %v512_v21 = vsub.f32 %v417_v20, %v1456_v2  ;;  %v509_v12 = vsub.f32 %v1388_v22, %v1456_v2  ;;  %v510_v17 = vsub.f32 %v1382_v19, %v1456_v2 }
 0x1d1   :  { %v525_v8 = vadd.f32 1e-05, %v508_v7 }
 0x1d3   :  { %1148 = vrsqrt.f32 %v525_v8  ;;  %vm532_vm1 = vweird.f32 %v525_v8 }
 0x1d9   :  { %v1149_v9 = vpop.eup %1148 }
 0x1da   :  { %v527_v15 = vmul.f32 %v1149_v9, %v525_v8  ;;  %vm533_vm0 = vweird.f32 %v1149_v9 }
 0x1db   :  { %vm534_vm2 = vmor %vm532_vm1, %vm533_vm0 }
 0x1dc   :  { %v528_v16 = vmul.f32 %v1149_v9, %v527_v15 }
 0x1de   :  { %v529_v37 = vmul.f32 0.5, %v528_v16 }
 0x1e0   :  { %v530_v32 = vsub.f32 1.5, %v529_v37 }
 0x1e2   :  { %v531_v38 = vmul.f32 %v1149_v9, %v530_v32 }
 0x1e4   :  { %v535_v48 = vsel %vm534_vm2, %v1149_v9, %v531_v38 }
 0x1e5   :  { %v551_v53 = vmul.f32 %v535_v48, %v524_v40  ;;  %v550_v54 = vmul.f32 %v535_v48, %v523_v41  ;;  %v548_v33 = vmul.f32 %v535_v48, %v521_v47  ;;  %v549_v57 = vmul.f32 %v535_v48, %v522_v42 }
 0x1e6   :  { %v546_v13 = vmul.f32 %v535_v48, %v519_v50  ;;  %v547_v45 = vmul.f32 %v535_v48, %v520_v23  ;;  %v544_v0 = vmul.f32 %v535_v48, %v517_v10  ;;  %v545_v1 = vmul.f32 %v535_v48, %v518_v58 }
 0x1e7   :  { %v570_v52 = vmul.f32 %v1462_v46, %v550_v54  ;;  %v571_v56 = vmul.f32 %v1462_v46, %v551_v53  ;;  %v568_v4 = vmul.f32 %v1462_v46, %v548_v33  ;;  %v569_v63 = vmul.f32 %v1462_v46, %v549_v57 }
 0x1e8   :  { %v566_v61 = vmul.f32 %v1462_v46, %v546_v13  ;;  %v567_v59 = vmul.f32 %v1462_v46, %v547_v45  ;;  %v564_v8 = vmul.f32 %v1462_v46, %v544_v0  ;;  %v565_v9 = vmul.f32 %v1462_v46, %v545_v1 }
 0x1e9   :  { %v590_v60 = vadd.f32 %v1479_v5, %v570_v52  ;;  %v591_v11 = vadd.f32 %v1479_v5, %v571_v56  ;;  %v588_v6 = vadd.f32 %v1479_v5, %v568_v4  ;;  %v589_v44 = vadd.f32 %v1479_v5, %v569_v63 }
 0x1ea   :  { %v586_v62 = vadd.f32 %v1479_v5, %v566_v61  ;;  %v587_v7 = vadd.f32 %v1479_v5, %v567_v59  ;;  %v542_v16 = vmul.f32 %v535_v48, %v515_v51  ;;  %v543_v37 = vmul.f32 %v535_v48, %v516_v55  ;;  %v1126_v61 = vld [vmem:[#allocation7 + $0x58] sm:$0xff] }
 0x1eb   :  { %v616_v3 = vpack.c.bf16 %v591_v11, %v590_v60  ;;  %v615_v15 = vpack.c.bf16 %v589_v44, %v588_v6  ;;  %v584_v49 = vadd.f32 %v1479_v5, %v564_v8  ;;  %v585_v32 = vadd.f32 %v1479_v5, %v565_v9  ;;  %v1129_v60 = vld [vmem:[#allocation7 + $0x70] sm:$0xff]  ;;  %v1127_v11 = vld [vmem:[#allocation7 + $0x60] sm:$0xff] }
 0x1ec   :  { %v614_v43 = vpack.c.bf16 %v587_v7, %v586_v62  ;;  %v562_v38 = vmul.f32 %v1462_v46, %v542_v16  ;;  %v563_v40 = vmul.f32 %v1462_v46, %v543_v37  ;;  %v540_v41 = vmul.f32 %v535_v48, %v513_v30 }
 0x1ed   :  { %617 = vmatpush.bf16.msra.mxu2 %v616_v3  ;;  %v541_v47 = vmul.f32 %v535_v48, %v514_v35  ;;  %v613_v29 = vpack.c.bf16 %v585_v32, %v584_v49  ;;  %v538_v34 = vmul.f32 %v535_v48, %v511_v18  ;;  %v539_v42 = vmul.f32 %v535_v48, %v512_v21 }
 0x1ee   :  { %v582_v50 = vadd.f32 %v1479_v5, %v562_v38  ;;  %v583_v23 = vadd.f32 %v1479_v5, %v563_v40  ;;  %v560_v53 = vmul.f32 %v1462_v46, %v540_v41  ;;  %v536_v20 = vmul.f32 %v535_v48, %v509_v12 }
 0x1ef   :  { %v561_v54 = vmul.f32 %v1462_v46, %v541_v47  ;;  %v558_v14 = vmul.f32 %v1462_v46, %v538_v34  ;;  %v537_v33 = vmul.f32 %v535_v48, %v510_v17  ;;  %v559_v52 = vmul.f32 %v1462_v46, %v539_v42 }
 0x1f0   :  { %v612_v57 = vpack.c.bf16 %v583_v23, %v582_v50  ;;  %v580_v13 = vadd.f32 %v1479_v5, %v560_v53  ;;  %v556_v56 = vmul.f32 %v1462_v46, %v536_v20  ;;  %v1552_v23 = vld [vmem:[%s1685_s3 + $0x1] ss:$0 sm:$0xff] }
 0x1f1   :  { %618 = vmatpush.bf16.msra.mxu2 %v615_v15  ;;  %v581_v45 = vadd.f32 %v1479_v5, %v561_v54  ;;  %v578_v22 = vadd.f32 %v1479_v5, %v558_v14  ;;  %v579_v19 = vadd.f32 %v1479_v5, %v559_v52  ;;  %v557_v2 = vmul.f32 %v1462_v46, %v537_v33  ;;  %v1130_v46 = vld [vmem:[#allocation7 + $0x78] sm:$0xff] }
 0x1f2   :  { %v576_v48 = vadd.f32 %v1479_v5, %v556_v56  ;;  %727 = vmatpush.bf16.msra.mxu3 %v1130_v46 }
 0x1f3   :  { %v611_v4 = vpack.c.bf16 %v581_v45, %v580_v13  ;;  %v610_v63 = vpack.c.bf16 %v579_v19, %v578_v22  ;;  %v577_v10 = vadd.f32 %v1479_v5, %v557_v2  ;;  %v1128_v5 = vld [vmem:[#allocation7 + $0x68] sm:$0xff] }
 0x1f5   :  { %619 = vmatpush.bf16.msra.mxu2 %v614_v43  ;;  %v609_v58 = vpack.c.bf16 %v577_v10, %v576_v48 }
 0x1f6   :  { %728 = vmatpush.bf16.msra.mxu3 %v1129_v60 }
 0x1f9   :  { %620 = vmatpush.bf16.msra.mxu2 %v613_v29 }
 0x1fa   :  { %729 = vmatpush.bf16.msra.mxu3 %v1128_v5 }
 0x1fd   :  { %621 = vmatpush.bf16.msra.mxu2 %v612_v57 }
 0x1fe   :  { %730 = vmatpush.bf16.msra.mxu3 %v1127_v11 }
 0x201   :  { %622 = vmatpush.bf16.msra.mxu2 %v611_v4 }
 0x202   :  { %731 = vmatpush.bf16.msra.mxu3 %v1126_v61 }
 0x205   :  { %623 = vmatpush.bf16.msra.mxu2 %v610_v63 }
 0x209   :  { %624 = vmatpush.bf16.msra.mxu2 %v609_v58 }
 0x20c   :  { %625 = vmatmul.bf16.vlgmr.msra.gmra.mxu2 %v1341_v24  ;;  %v1125_v24 = vld [vmem:[#allocation7 + $0x50] sm:$0xff] }
 0x20d   :  { %732 = vmatpush.bf16.msra.mxu3 %v1125_v24 }
 0x21c   :  { %630 = vmatmul.bf16.gmra.mxu2 %v1344_v25  ;;  %v1124_v25 = vld [vmem:[#allocation7 + $0x48] sm:$0xff] }
 0x21d   :  { %733 = vmatpush.bf16.msra.mxu3 %v1124_v25 }
 0x22c   :  { %635 = vmatmul.bf16.gmra.mxu2 %v1347_v26  ;;  %v1123_v26 = vld [vmem:[#allocation7 + $0x40] sm:$0xff] }
 0x22d   :  { %734 = vmatpush.bf16.msra.mxu3 %v1123_v26 }
 0x23c   :  { %640 = vmatmul.bf16.gmra.mxu2 %v1350_v27 }
 0x24c   :  { %645 = vmatmul.bf16.gmra.mxu2 %v1353_v28 }
 0x25c   :  { %650 = vmatmul.bf16.gmra.mxu2 %v1356_v31 }
 0x26c   :  { %655 = vmatmul.bf16.gmra.mxu2 %v1359_v36 }
 0x27c   :  { %660 = vmatmul.bf16.gmra.mxu2 %v1362_v39 }
 0x28f   :  { %v626_v27 = vpop.f32.mrf.mxu2 }
 0x297   :  { %v628_v28 = vpop.f32.mrf.mxu2 }
 0x298   :  { %v666_v31 = vpack.c.bf16 %v628_v28, %v626_v27 }
 0x29a   :  { %735 = vmatmul.bf16.vlgmr.msra.gmra.mxu3 %v666_v31 }
 0x29f   :  { %v631_v59 = vpop.f32.mrf.mxu2 }
 0x2a7   :  { %v633_v0 = vpop.f32.mrf.mxu2 }
 0x2a8   :  { %v667_v1 = vpack.c.bf16 %v633_v0, %v631_v59 }
 0x2aa   :  { %740 = vmatmul.bf16.gmra.mxu3 %v667_v1 }
 0x2af   :  { %v636_v3 = vpop.f32.mrf.mxu2 }
 0x2b7   :  { %v638_v6 = vpop.f32.mrf.mxu2 }
 0x2b8   :  { %v668_v44 = vpack.c.bf16 %v638_v6, %v636_v3 }
 0x2ba   :  { %745 = vmatmul.bf16.gmra.mxu3 %v668_v44 }
 0x2bf   :  { %v641_v36 = vpop.f32.mrf.mxu2 }
 0x2c7   :  { %v643_v51 = vpop.f32.mrf.mxu2 }
 0x2c8   :  { %v669_v55 = vpack.c.bf16 %v643_v51, %v641_v36 }
 0x2ca   :  { %750 = vmatmul.bf16.gmra.mxu3 %v669_v55 }
 0x2cf   :  { %v646_v62 = vpop.f32.mrf.mxu2 }
 0x2d7   :  { %v648_v7 = vpop.f32.mrf.mxu2 }
 0x2d8   :  { %v670_v8 = vpack.c.bf16 %v648_v7, %v646_v62 }
 0x2da   :  { %755 = vmatmul.bf16.gmra.mxu3 %v670_v8 }
 0x2df   :  { %v651_v39 = vpop.f32.mrf.mxu2 }
 0x2e7   :  { %v653_v9 = vpop.f32.mrf.mxu2 }
 0x2e8   :  { %v671_v15 = vpack.c.bf16 %v653_v9, %v651_v39 }
 0x2ea   :  { %760 = vmatmul.bf16.gmra.mxu3 %v671_v15 }
 0x2ef   :  { %v656_v16 = vpop.f32.mrf.mxu2 }
 0x2f7   :  { %v658_v37 = vpop.f32.mrf.mxu2 }
 0x2f8   :  { %v672_v30 = vpack.c.bf16 %v658_v37, %v656_v16 }
 0x2fa   :  { %765 = vmatmul.bf16.gmra.mxu3 %v672_v30 }
 0x2ff   :  { %v661_v35 = vpop.f32.mrf.mxu2 }
 0x307   :  { %v663_v43 = vpop.f32.mrf.mxu2 }
 0x308   :  { %v673_v49 = vpack.c.bf16 %v663_v43, %v661_v35 }
 0x30a   :  { %770 = vmatmul.bf16.gmra.mxu3 %v673_v49 }
 0x31d   :  { %v736_v32 = vpop.f32.mrf.mxu3 }
 0x31e   :  { %v737_v14 = vadd.f32 %v1552_v23, %v736_v32 }
 0x320   :  { %v1572_v52 = vmax.f32 %v737_v14, 0.0 }
 0x322   :  { %v829_v58 = vmul.f32 %v1572_v52, %v1572_v52 }
 0x325   :  { %v738_v38 = vpop.f32.mrf.mxu3 }
 0x326   :  { %v739_v54 = vadd.f32 %v1552_v23, %v738_v38 }
 0x328   :  { %v1566_v57 = vmax.f32 %v739_v54, 0.0 }
 0x32a   :  { %v830_v19 = vmul.f32 %v1566_v57, %v1566_v57  ;;  %v808_v60 = vadd.f32 %v1566_v57, %v1572_v52 }
 0x32c   :  { %v845_v24 = vadd.f32 %v830_v19, %v829_v58 }
 0x32d   :  { %v741_v40 = vpop.f32.mrf.mxu3 }
 0x32e   :  { %v1555_v53 = vadd.f32 %v1552_v23, %v741_v40 }
 0x330   :  { %v778_v20 = vmax.f32 %v1555_v53, 0.0 }
 0x332   :  { %v794_v56 = vmul.f32 0.0, %v778_v20 }
 0x334   :  { %v831_v46 = vmul.f32 %v794_v56, %v794_v56  ;;  %v809_v25 = vadd.f32 %v808_v60, %v794_v56 }
 0x335   :  { %v743_v41 = vpop.f32.mrf.mxu3 }
 0x336   :  { %v1559_v12 = vadd.f32 %v1552_v23, %v743_v41  ;;  %v846_v31 = vadd.f32 %v845_v24, %v831_v46 }
 0x338   :  { %v779_v13 = vmax.f32 %v1559_v12, 0.0 }
 0x33a   :  { %v795_v2 = vmul.f32 0.0, %v779_v13 }
 0x33c   :  { %v832_v26 = vmul.f32 %v795_v2, %v795_v2  ;;  %v810_v0 = vadd.f32 %v809_v25, %v795_v2 }
 0x33d   :  { %v746_v47 = vpop.f32.mrf.mxu3 }
 0x33e   :  { %v1564_v33 = vadd.f32 %v1552_v23, %v746_v47  ;;  %v847_v36 = vadd.f32 %v846_v31, %v832_v26 }
 0x340   :  { %v780_v4 = vmax.f32 %v1564_v33, 0.0  ;;  %v1146_v33 = vld [vmem:[#allocation8 + $0x1] ss:$0 sm:$0xff] }
 0x342   :  { %v796_v5 = vmul.f32 0.0, %v780_v4 }
 0x344   :  { %v833_v1 = vmul.f32 %v796_v5, %v796_v5  ;;  %v811_v51 = vadd.f32 %v810_v0, %v796_v5 }
 0x345   :  { %v748_v18 = vpop.f32.mrf.mxu3 }
 0x346   :  { %v1570_v45 = vadd.f32 %v1552_v23, %v748_v18  ;;  %v848_v9 = vadd.f32 %v847_v36, %v833_v1 }
 0x348   :  { %v781_v63 = vmax.f32 %v1570_v45, 0.0 }
 0x34a   :  { %v797_v27 = vmul.f32 0.0, %v781_v63 }
 0x34c   :  { %v834_v55 = vmul.f32 %v797_v27, %v797_v27  ;;  %v812_v15 = vadd.f32 %v811_v51, %v797_v27 }
 0x34d   :  { %v751_v21 = vpop.f32.mrf.mxu3 }
 0x34e   :  { %v1578_v22 = vadd.f32 %v1552_v23, %v751_v21  ;;  %v849_v43 = vadd.f32 %v848_v9, %v834_v55 }
 0x350   :  { %v782_v11 = vmax.f32 %v1578_v22, 0.0 }
 0x352   :  { %v798_v3 = vmul.f32 0.0, %v782_v11 }
 0x354   :  { %v835_v16 = vmul.f32 %v798_v3, %v798_v3  ;;  %v813_v49 = vadd.f32 %v812_v15, %v798_v3 }
 0x355   :  { %v753_v29 = vpop.f32.mrf.mxu3 }
 0x356   :  { %v1586_v48 = vadd.f32 %v1552_v23, %v753_v29  ;;  %v850_v47 = vadd.f32 %v849_v43, %v835_v16 }
 0x358   :  { %v783_v28 = vmax.f32 %v1586_v48, 0.0 }
 0x35a   :  { %v799_v62 = vmul.f32 0.0, %v783_v28 }
 0x35c   :  { %v836_v32 = vmul.f32 %v799_v62, %v799_v62  ;;  %v814_v18 = vadd.f32 %v813_v49, %v799_v62 }
 0x35d   :  { %v756_v34 = vpop.f32.mrf.mxu3 }
 0x35e   :  { %v1596_v61 = vadd.f32 %v1552_v23, %v756_v34 }
 0x360   :  { %v784_v6 = vmax.f32 %v1596_v61, 0.0 }
 0x362   :  { %v800_v37 = vmul.f32 0.0, %v784_v6 }
 0x364   :  { %v837_v21 = vmul.f32 %v800_v37, %v800_v37 }
 0x365   :  { %v758_v42 = vpop.f32.mrf.mxu3 }
 0x366   :  { %v1602_v59 = vadd.f32 %v1552_v23, %v758_v42  ;;  %v851_v42 = vadd.f32 %v850_v47, %v836_v32 }
 0x368   :  { %v785_v8 = vmax.f32 %v1602_v59, 0.0  ;;  %v852_v2 = vadd.f32 %v851_v42, %v837_v21 }
 0x36a   :  { %v801_v38 = vmul.f32 0.0, %v785_v8 }
 0x36d   :  { %v761_v50 = vpop.f32.mrf.mxu3 }
 0x36e   :  { %v1608_v44 = vadd.f32 %v1552_v23, %v761_v50  ;;  %v815_v50 = vadd.f32 %v814_v18, %v800_v37 }
 0x370   :  { %v786_v30 = vmax.f32 %v1608_v44, 0.0  ;;  %v1147_v44 = vld [vmem:[%s1687_s5 + $0x1] ss:$0 sm:$0xff]  ;;  %s1290_s5 = smov [#allocation10]  }
 0x371   :  { %s992_s26 = sshll.u32 %s1290_s5, 4  ;;  %s993_s26 = int_to_ptr.vmem [resolvable:$true] %s992_s26 }
 0x372   :  { %v802_v29 = vmul.f32 0.0, %v786_v30 }
 0x374   :  { %v839_v58 = vmul.f32 %v802_v29, %v802_v29 }
 0x375   :  { %v763_v17 = vpop.f32.mrf.mxu3 }
 0x376   :  { %v1614_v39 = vadd.f32 %v1552_v23, %v763_v17  ;;  %v838_v17 = vmul.f32 %v801_v38, %v801_v38 }
 0x378   :  { %v787_v40 = vmax.f32 %v1614_v39, 0.0  ;;  %v853_v5 = vadd.f32 %v852_v2, %v838_v17 }
 0x37a   :  { %v803_v14 = vmul.f32 0.0, %v787_v40  ;;  %v854_v27 = vadd.f32 %v853_v5, %v839_v58 }
 0x37c   :  { %v840_v25 = vmul.f32 %v803_v14, %v803_v14 }
 0x37d   :  { %v766_v10 = vpop.f32.mrf.mxu3 }
 0x37e   :  { %v1620_v35 = vadd.f32 %v1552_v23, %v766_v10  ;;  %v816_v10 = vadd.f32 %v815_v50, %v801_v38  ;;  %v855_v36 = vadd.f32 %v854_v27, %v840_v25 }
 0x380   :  { %v788_v34 = vmax.f32 %v1620_v35, 0.0  ;;  %v817_v24 = vadd.f32 %v816_v10, %v802_v29 }
 0x382   :  { %v804_v46 = vmul.f32 0.0, %v788_v34  ;;  %v818_v31 = vadd.f32 %v817_v24, %v803_v14 }
 0x384   :  { %v841_v0 = vmul.f32 %v804_v46, %v804_v46  ;;  %v819_v51 = vadd.f32 %v818_v31, %v804_v46 }
 0x385   :  { %v768_v7 = vpop.f32.mrf.mxu3 }
 0x386   :  { %v1626_v41 = vadd.f32 %v1552_v23, %v768_v7  ;;  %v856_v7 = vadd.f32 %v855_v36, %v841_v0 }
 0x388   :  { %v789_v56 = vmax.f32 %v1626_v41, 0.0 }
 0x38a   :  { %v805_v26 = vmul.f32 0.0, %v789_v56 }
 0x38c   :  { %v842_v55 = vmul.f32 %v805_v26, %v805_v26  ;;  %v820_v9 = vadd.f32 %v819_v51, %v805_v26 }
 0x38d   :  { %v771_v54 = vpop.f32.mrf.mxu3 }
 0x38e   :  { %v1635_v19 = vadd.f32 %v1552_v23, %v771_v54  ;;  %v857_v37 = vadd.f32 %v856_v7, %v842_v55 }
 0x390   :  { %v790_v60 = vmax.f32 %v1635_v19, 0.0 }
 0x392   :  { %v806_v1 = vmul.f32 0.0, %v790_v60 }
 0x394   :  { %v843_v15 = vmul.f32 %v806_v1, %v806_v1  ;;  %v821_v43 = vadd.f32 %v820_v9, %v806_v1 }
 0x395   :  { %v773_v3 = vpop.f32.mrf.mxu3 }
 0x396   :  { %v774_v62 = vadd.f32 %v1552_v23, %v773_v3  ;;  %v858_v32 = vadd.f32 %v857_v37, %v843_v15 }
 0x398   :  { %v791_v16 = vmax.f32 %v774_v62, 0.0 }
 0x39a   :  { %v807_v49 = vmul.f32 0.0, %v791_v16 }
 0x39c   :  { %v822_v38 = vadd.f32 %v821_v43, %v807_v49  ;;  %v844_v47 = vmul.f32 %v807_v49, %v807_v49 }
 0x39e   :  { %v823_v18 = vrot.slane %v822_v38, 4  ;;  %v859_v21 = vadd.f32 %v858_v32, %v844_v47 }
 0x3a0   :  { %v824_v29 = vadd.f32 %v823_v18, %v822_v38  ;;  %v860_v42 = vrot.slane %v859_v21, 4 }
 0x3a2   :  { %v825_v50 = vrot.slane %v824_v29, 2  ;;  %v861_v54 = vadd.f32 %v860_v42, %v859_v21 }
 0x3a4   :  { %v826_v17 = vadd.f32 %v825_v50, %v824_v29  ;;  %v862_v14 = vrot.slane %v861_v54, 2 }
 0x3a6   :  { %v827_v2 = vrot.slane %v826_v17, 1  ;;  %v863_v23 = vadd.f32 %v862_v14, %v861_v54 }
 0x3a8   :  { %v828_v10 = vadd.f32 %v827_v2, %v826_v17  ;;  %v864_v58 = vrot.slane %v863_v23, 1 }
 0x3aa   :  { %v865_v46 = vadd.f32 %v864_v58, %v863_v23  ;;  %v866_v5 = vmul.f32 0.0625, %v828_v10 }
 0x3ac   :  { %v867_v24 = vmul.f32 0.0625, %v865_v46  ;;  %v868_v25 = vmul.f32 %v866_v5, %v866_v5  ;;  %v871_v55 = vsub.f32 %v1572_v52, %v866_v5  ;;  %v872_v62 = vsub.f32 %v1566_v57, %v866_v5 }
 0x3ad   :  { %v873_v9 = vsub.f32 %v778_v20, %v866_v5  ;;  %v874_v15 = vsub.f32 %v779_v13, %v866_v5  ;;  %v875_v37 = vsub.f32 %v780_v4, %v866_v5  ;;  %v876_v43 = vsub.f32 %v781_v63, %v866_v5 }
 0x3ae   :  { %v869_v26 = vsub.f32 %v867_v24, %v868_v25  ;;  %v877_v52 = vsub.f32 %v782_v11, %v866_v5  ;;  %v878_v57 = vsub.f32 %v783_v28, %v866_v5  ;;  %v879_v53 = vsub.f32 %v784_v6, %v866_v5 }
 0x3af   :  { %v880_v45 = vsub.f32 %v785_v8, %v866_v5  ;;  %v886_v4 = vsub.f32 %v791_v16, %v866_v5  ;;  %v881_v22 = vsub.f32 %v786_v30, %v866_v5  ;;  %v882_v48 = vsub.f32 %v787_v40, %v866_v5 }
 0x3b0   :  { %v870_v27 = vmax.f32 %v869_v26, 0.0  ;;  %v883_v11 = vsub.f32 %v788_v34, %v866_v5  ;;  %v884_v28 = vsub.f32 %v789_v56, %v866_v5  ;;  %v885_v39 = vsub.f32 %v790_v60, %v866_v5 }
 0x3b2   :  { %v887_v31 = vadd.f32 1e-05, %v870_v27 }
 0x3b4   :  { %1150 = vrsqrt.f32 %v887_v31  ;;  %vm894_vm4 = vweird.f32 %v887_v31 }
 0x3ba   :  { %v1151_v0 = vpop.eup %1150 }
 0x3bb   :  { %v889_v1 = vmul.f32 %v1151_v0, %v887_v31  ;;  %vm895_vm3 = vweird.f32 %v1151_v0 }
 0x3bc   :  { %vm896_vm5 = vmor %vm894_vm4, %vm895_vm3 }
 0x3bd   :  { %v890_v3 = vmul.f32 %v1151_v0, %v889_v1 }
 0x3bf   :  { %v891_v36 = vmul.f32 0.5, %v890_v3 }
 0x3c1   :  { %v892_v51 = vsub.f32 1.5, %v891_v36 }
 0x3c3   :  { %v893_v7 = vmul.f32 %v1151_v0, %v892_v51 }
 0x3c5   :  { %v897_v20 = vsel %vm896_vm5, %v1151_v0, %v893_v7 }
 0x3c6   :  { %v898_v49 = vmul.f32 %v897_v20, %v871_v55  ;;  %v899_v12 = vmul.f32 %v897_v20, %v872_v62  ;;  %v900_v13 = vmul.f32 %v897_v20, %v873_v9  ;;  %v901_v32 = vmul.f32 %v897_v20, %v874_v15 }
 0x3c7   :  { %v902_v63 = vmul.f32 %v897_v20, %v875_v37  ;;  %v903_v38 = vmul.f32 %v897_v20, %v876_v43  ;;  %v904_v61 = vmul.f32 %v897_v20, %v877_v52  ;;  %v905_v6 = vmul.f32 %v897_v20, %v878_v57 }
 0x3c8   :  { %v906_v47 = vmul.f32 %v897_v20, %v879_v53  ;;  %v913_v59 = vmul.f32 %v897_v20, %v886_v4  ;;  %v919_v8 = vmul.f32 %v1146_v33, %v898_v49  ;;  %v920_v16 = vmul.f32 %v1146_v33, %v899_v12 }
 0x3c9   :  { %v921_v18 = vmul.f32 %v1146_v33, %v900_v13  ;;  %v922_v21 = vmul.f32 %v1146_v33, %v901_v32  ;;  %v907_v30 = vmul.f32 %v897_v20, %v880_v45  ;;  %v923_v35 = vmul.f32 %v1146_v33, %v902_v63 }
 0x3ca   :  { %v924_v40 = vmul.f32 %v1146_v33, %v903_v38  ;;  %v908_v34 = vmul.f32 %v897_v20, %v881_v22  ;;  %v909_v41 = vmul.f32 %v897_v20, %v882_v48  ;;  %v910_v56 = vmul.f32 %v897_v20, %v883_v11 }
 0x3cb   :  { %v925_v29 = vmul.f32 %v1146_v33, %v904_v61  ;;  %v911_v42 = vmul.f32 %v897_v20, %v884_v28  ;;  %v926_v50 = vmul.f32 %v1146_v33, %v905_v6  ;;  %v927_v54 = vmul.f32 %v1146_v33, %v906_v47 }
 0x3cc   :  { %v934_v17 = vmul.f32 %v1146_v33, %v913_v59  ;;  %v940_v14 = vadd.f32 %v1147_v44, %v919_v8  ;;  %v941_v2 = vadd.f32 %v1147_v44, %v920_v16  ;;  %v942_v23 = vadd.f32 %v1147_v44, %v921_v18 }
 0x3cd   :  { %v943_v10 = vadd.f32 %v1147_v44, %v922_v21  ;;  %v928_v58 = vmul.f32 %v1146_v33, %v907_v30  ;;  %v944_v24 = vadd.f32 %v1147_v44, %v923_v35  ;;  %v945_v19 = vadd.f32 %v1147_v44, %v924_v40 }
 0x3ce   :  { %v955_v46 = vadd.f32 %v1147_v44, %v934_v17  ;;  %v912_v60 = vmul.f32 %v897_v20, %v885_v39  ;;  %v929_v5 = vmul.f32 %v1146_v33, %v908_v34  ;;  %v946_v25 = vadd.f32 %v1147_v44, %v925_v29  ;;  %972 = vst [vmem:[#allocation10] sm:$0xff] %v940_v14 }
 0x3cf   :  { %v930_v26 = vmul.f32 %v1146_v33, %v909_v41  ;;  %v931_v27 = vmul.f32 %v1146_v33, %v910_v56  ;;  %v947_v0 = vadd.f32 %v1147_v44, %v926_v50  ;;  %973 = vst [vmem:[#allocation10 + $0x8] sm:$0xff] %v941_v2  ;;  %v948_v1 = vadd.f32 %v1147_v44, %v927_v54 }
 0x3d0   :  { %v971_v31 = vmul.f32 0.0, %v955_v46  ;;  %v958_v3 = vmul.f32 0.0, %v942_v23  ;;  %v959_v36 = vmul.f32 0.0, %v943_v10  ;;  %v960_v51 = vmul.f32 0.0, %v944_v24 }
 0x3d1   :  { %v932_v55 = vmul.f32 %v1146_v33, %v911_v42  ;;  %v949_v62 = vadd.f32 %v1147_v44, %v928_v58  ;;  %v961_v7 = vmul.f32 0.0, %v945_v19  ;;  %v933_v9 = vmul.f32 %v1146_v33, %v912_v60 }
 0x3d2   :  { %987 = vst [vmem:[#allocation10 + $0x78] sm:$0xff] %v971_v31  ;;  %v950_v15 = vadd.f32 %v1147_v44, %v929_v5  ;;  %v962_v37 = vmul.f32 0.0, %v946_v25  ;;  %v951_v43 = vadd.f32 %v1147_v44, %v930_v26  ;;  %v963_v52 = vmul.f32 0.0, %v947_v0 }
 0x3d3   :  { %974 = vst [vmem:[#allocation10 + $0x10] sm:$0xff] %v958_v3  ;;  %v952_v57 = vadd.f32 %v1147_v44, %v931_v27  ;;  %v964_v53 = vmul.f32 0.0, %v948_v1  ;;  %v953_v20 = vadd.f32 %v1147_v44, %v932_v55  ;;  %v965_v49 = vmul.f32 0.0, %v949_v62 }
 0x3d4   :  { %975 = vst [vmem:[#allocation10 + $0x18] sm:$0xff] %v959_v36  ;;  %v954_v12 = vadd.f32 %v1147_v44, %v933_v9  ;;  %v966_v13 = vmul.f32 0.0, %v950_v15  ;;  %v967_v32 = vmul.f32 0.0, %v951_v43 }
 0x3d5   :  { %976 = vst [vmem:[#allocation10 + $0x20] sm:$0xff] %v960_v51  ;;  %v968_v45 = vmul.f32 0.0, %v952_v57  ;;  %v969_v33 = vmul.f32 0.0, %v953_v20 }
 0x3d6   :  { %977 = vst [vmem:[#allocation10 + $0x28] sm:$0xff] %v961_v7  ;;  %v970_v4 = vmul.f32 0.0, %v954_v12 }
 0x3d7   :  { %978 = vst [vmem:[#allocation10 + $0x30] sm:$0xff] %v962_v37 }
 0x3d8   :  { %979 = vst [vmem:[#allocation10 + $0x38] sm:$0xff] %v963_v52 }
 0x3d9   :  { %980 = vst [vmem:[#allocation10 + $0x40] sm:$0xff] %v964_v53 }
 0x3da   :  { %981 = vst [vmem:[#allocation10 + $0x48] sm:$0xff] %v965_v49 }
 0x3db   :  { %982 = vst [vmem:[#allocation10 + $0x50] sm:$0xff] %v966_v13 }
 0x3dc   :  { %983 = vst [vmem:[#allocation10 + $0x58] sm:$0xff] %v967_v32 }
 0x3dd   :  { %984 = vst [vmem:[#allocation10 + $0x60] sm:$0xff] %v968_v45 }
 0x3de   :  { %985 = vst [vmem:[#allocation10 + $0x68] sm:$0xff] %v969_v33 }
 0x3df   :  { %986 = vst [vmem:[#allocation10 + $0x70] sm:$0xff] %v970_v4 }
 0x3e0   :  { %1000 = dma.vmem_to_hbm [thread:$0]  %s993_s26, 2048, %s995_s7, [#allocation4], %s1281_s29, %s1281_s29, %s1282_s30  }
 0x3e1   :  { %1278 = dma.done.wait [#allocation4], 2048  }
 0x3e2   :  { %1279 = vsyncadd [#allocation4], 4294965248 }
 0x3e3   :  { %1005 = vsyncpa [#allocation3], 1 }
 0x3e4   :  { %1006 = vsyncpa [#allocation6], 1 }
 0x3e5   :  { %1007 = vsyncpa [#allocation9], 1 }
 0x3e6   :  { %1008 = vsyncpa [#allocation4], 1 }

</bundles_post_ra>
